<compile_context>
chip_gen: v5e
topology: v5e:2x2
jax: 0.10.0
libtpu: 0.0.40
codegen_flags: <defaults>
</compile_context>

<pallas_src>
import functools

import jax
import jax.numpy as jnp
from jax.experimental import pallas as pl
from jax.experimental.pallas import tpu as pltpu


def _argmax_mod_kernel(num_categories, total_len, rows,
                       f_ref, g_ref, max_sc, idx_sc):
    # f_ref : (B_TILE, L_TILE) input chunk            (VMEM, auto-pipelined)
    # g_ref : (B_TILE, 1) int32 per-row guess output  (resident across k axis)
    # max_sc: (B_TILE, 128) fold-dtype per-lane running max        (VMEM scratch)
    # idx_sc: (B_TILE, 128) int32 per-lane running global segment  (VMEM scratch)
    k = pl.program_id(1)
    b_tile, l_tile = f_ref.shape
    n_seg = l_tile // 128
    n_grp = b_tile // rows
    fold_dtype = max_sc.dtype
    need_mask = (total_len % l_tile) != 0          # static (trace-time) flag

    @pl.when(k == 0)
    def _init():
        max_sc[...] = jnp.full_like(max_sc, -jnp.inf)
        idx_sc[...] = jnp.zeros_like(idx_sc)

    lane = jax.lax.broadcasted_iota(jnp.int32, (1, 128), 1)   # only (1,128)
    col_base = k * l_tile

    # Fold one sublane row-group at a time so the per-lane accumulators live
    # in vregs across the whole segment loop (bounded live range, no spills).
    @pl.loop(0, n_grp)
    def _fold_row_group(g):
        r = pl.multiple_of(g * rows, rows)
        run_max = max_sc[pl.ds(r, rows), :]
        run_seg = idx_sc[pl.ds(r, rows), :]
        for s in range(n_seg):
            seg = f_ref[pl.ds(r, rows), pl.ds(s * 128, 128)].astype(fold_dtype)
            greater = seg > run_max                       # strict > keeps first occurrence
            if need_mask:
                valid = (col_base + s * 128 + lane) < total_len
                greater = jnp.logical_and(greater, valid)
            run_max = jnp.where(greater, seg, run_max)
            run_seg = jnp.where(greater, k * n_seg + s, run_seg)
        max_sc[pl.ds(r, rows), :] = run_max
        idx_sc[pl.ds(r, rows), :] = run_seg

    @pl.when(k == pl.num_programs(1) - 1)
    def _finalize():
        lane_idx = jax.lax.broadcasted_iota(jnp.int32, (b_tile, 128), 1)
        lane_max = max_sc[...].astype(jnp.float32)        # bf16->f32 is exact
        flat_idx = idx_sc[...] * 128 + lane_idx
        row_max = jnp.max(lane_max, axis=1, keepdims=True)
        sentinel = jnp.iinfo(jnp.int32).max
        cand = jnp.where(lane_max == row_max, flat_idx, sentinel)
        best = jnp.min(cand, axis=1, keepdims=True)       # first occurrence
        if num_categories & (num_categories - 1) == 0:
            guess = best & (num_categories - 1)           # cheap pow-2 modulo
        else:
            guess = best % num_categories
        g_ref[...] = guess.astype(g_ref.dtype)


def _round_up(x, m):
    return (x + m - 1) // m * m


def _device_kind():
    try:
        return jax.devices()[0].device_kind.lower()
    except Exception:
        return ""


def _fold_dtype_for(dtype):
    dtype = jnp.dtype(dtype)
    if dtype == jnp.dtype(jnp.bfloat16):
        kind = _device_kind()
        # Pre-v6 chips have no bf16 VPU path: fold in f32 there only.
        if any(t in kind for t in ("v2", "v3", "v4", "v5")):
            return jnp.float32
        return jnp.bfloat16
    return jnp.float32


def soft_length_accuracy(frequencies, targets, *, l_tile_max=8192, b_tile_max=256):
    """SoftLengthAccuracy forward: mean((argmax(flat, axis=1) % C) == targets).

    NOTE: rows containing NaN yield guess 0 here (torch.argmax would return the
    NaN's index); only use with NaN-free frequencies.
    """
    B, S, C = frequencies.shape
    L = S * C
    flat = frequencies.reshape(B, L)          # contiguous reshape: no copy, no pad

    fold_dtype = _fold_dtype_for(frequencies.dtype)
    rows = 16 if jnp.dtype(fold_dtype) == jnp.dtype(jnp.bfloat16) else 8

    # Hard layout multiples: lane tile multiple of 128, batch tile multiple of
    # the sublane row-group size.
    l_tile = max(128, (min(l_tile_max, _round_up(L, 128)) // 128) * 128)
    b_tile = max(rows, (min(b_tile_max, _round_up(B, rows)) // rows) * rows)

    # v7x has 2 TensorCores: make sure the parallel batch axis has >= 2 blocks
    # whenever possible so both cores get work.
    kind = _device_kind()
    if ("v7" in kind or "7x" in kind) and B > rows and pl.cdiv(B, b_tile) < 2:
        b_tile = max(rows, _round_up(pl.cdiv(B, 2), rows))

    grid = (pl.cdiv(B, b_tile), pl.cdiv(L, l_tile))

    itemsize = jnp.dtype(frequencies.dtype).itemsize
    tile_bytes = b_tile * l_tile * itemsize
    scratch_bytes = b_tile * 128 * (jnp.dtype(fold_dtype).itemsize + 4)
    vmem_limit = min(max(32 << 20, 2 * tile_bytes + scratch_bytes + (8 << 20)),
                     64 << 20)

    kernel = functools.partial(_argmax_mod_kernel, C, L, rows)

    guesses = pl.pallas_call(
        kernel,
        out_shape=jax.ShapeDtypeStruct((B, 1), jnp.int32),
        grid_spec=pltpu.PrefetchScalarGridSpec(
            num_scalar_prefetch=0,
            grid=grid,
            in_specs=[pl.BlockSpec((b_tile, l_tile), lambda i, k: (i, k))],
            out_specs=pl.BlockSpec((b_tile, 1), lambda i, k: (i, 0)),
            scratch_shapes=[
                pltpu.VMEM((b_tile, 128), fold_dtype),
                pltpu.VMEM((b_tile, 128), jnp.int32),
            ],
        ),
        compiler_params=pltpu.CompilerParams(
            dimension_semantics=("parallel", "arbitrary"),
            vmem_limit_bytes=int(vmem_limit)),
        cost_estimate=pl.CostEstimate(
            flops=3 * B * L,
            transcendentals=0,
            bytes_accessed=B * L * itemsize + B * 4),
    )(flat)

    # Trivial epilogue in the wrapper (tiny): compare + mean in f32, then cast
    # once to the input dtype (matches torch.mean(matches)).
    matches = (guesses[:, 0] == targets.astype(jnp.int32)).astype(jnp.float32)
    return jnp.mean(matches).astype(frequencies.dtype)


def _reference(frequencies, targets):
    B, S, C = frequencies.shape
    flat = frequencies.reshape(B, S * C)
    guesses = jnp.argmax(flat, axis=1) % C
    matches = (guesses == targets).astype(frequencies.dtype)
    return jnp.mean(matches)


if __name__ == "__main__":
    key = jax.random.PRNGKey(0)
    k1, k2, k3, k4, k5, k6 = jax.random.split(key, 6)

    # Test 1: small f32, power-of-two C, single-chunk reduction axis.
    B, S, C = 4, 8, 32
    freqs = jax.random.normal(k1, (B, S, C), dtype=jnp.float32)
    tgts = jax.random.randint(k2, (B,), 0, C, dtype=jnp.int32)
    acc = jax.block_until_ready(soft_length_accuracy(freqs, tgts))
    ref = _reference(freqs, tgts)
    assert jnp.allclose(acc, ref), (acc, ref)

    # Test 2: non-power-of-two C, ragged flattened axis (masked tail), many
    # ties, small l_tile_max to force the multi-chunk fold + tail-mask path.
    B2, S2, C2 = 16, 50, 30
    freqs2 = jax.random.randint(k3, (B2, S2, C2), 0, 5).astype(jnp.float32)
    tgts2 = jax.random.randint(k4, (B2,), 0, C2, dtype=jnp.int32)
    acc2 = jax.block_until_ready(
        soft_length_accuracy(freqs2, tgts2, l_tile_max=256))
    ref2 = _reference(freqs2, tgts2)
    assert jnp.allclose(acc2, ref2), (acc2, ref2)

    # Test 3: bf16 path (native-dtype fold on v6e/v7x, f32 fold on older chips),
    # L < 128 so the lane mask is exercised in a single chunk.
    B3, S3, C3 = 8, 6, 20
    freqs3 = jax.random.normal(k5, (B3, S3, C3), dtype=jnp.float32).astype(jnp.bfloat16)
    tgts3 = jax.random.randint(k6, (B3,), 0, C3, dtype=jnp.int32)
    acc3 = jax.block_until_ready(soft_length_accuracy(freqs3, tgts3))
    ref3 = _reference(freqs3, tgts3)
    assert jnp.allclose(acc3.astype(jnp.float32), ref3.astype(jnp.float32)), (acc3, ref3)

    print("KERNEL_OK")
</pallas_src>

<mosaic_0001>
module attributes {stable_mosaic.version = 11 : i64} {
  func.func @_argmax_mod_kernel(%arg0: i32, %arg1: i32, %arg2: memref<8x256xf32, #tpu.memory_space<vmem>>, %arg3: memref<8x1xi32, #tpu.memory_space<vmem>>, %arg4: memref<8x128xf32, #tpu.memory_space<vmem>>, %arg5: memref<8x128xi32, #tpu.memory_space<vmem>>) attributes {dimension_semantics = [#tpu.dimension_semantics<parallel>, #tpu.dimension_semantics<arbitrary>], iteration_bounds = array<i64: 1, 1>, scalar_prefetch = 0 : i64, scratch_operands = 2 : i64, tpu.core_type = #tpu.core_type<tc>, window_params = [{transform_indices = @transform_0, window_bounds = array<i64: 8, 256>}, {transform_indices = @transform_1, window_bounds = array<i64: 8, 1>}]} {
    %c0_i32 = arith.constant 0 : i32
    %0 = arith.cmpi eq, %arg1, %c0_i32 : i32
    %1 = arith.extui %0 : i1 to i32
    %c0_i32_0 = arith.constant 0 : i32
    %2 = arith.cmpi ne, %1, %c0_i32_0 : i32
    scf.if %2 {
      %cst = arith.constant 0xFF800000 : f32
      %34 = vector.broadcast %cst : f32 to vector<8x128xf32>
      %c0_13 = arith.constant 0 : index
      %c0_14 = arith.constant 0 : index
      %35 = vector.load %arg4[%c0_13, %c0_14] : memref<8x128xf32, #tpu.memory_space<vmem>>, vector<8x128xf32>
      tpu.vector_store %arg4[%c0_13, %c0_14], %34 {strides = array<i32>} : memref<8x128xf32, #tpu.memory_space<vmem>>, vector<8x128xf32>,
      %c0_i32_15 = arith.constant 0 : i32
      %36 = vector.broadcast %c0_i32_15 : i32 to vector<8x128xi32>
      %c0_16 = arith.constant 0 : index
      %c0_17 = arith.constant 0 : index
      %37 = vector.load %arg5[%c0_16, %c0_17] : memref<8x128xi32, #tpu.memory_space<vmem>>, vector<8x128xi32>
      tpu.vector_store %arg5[%c0_16, %c0_17], %36 {strides = array<i32>} : memref<8x128xi32, #tpu.memory_space<vmem>>, vector<8x128xi32>,
    } else {
    }
    %c0_i32_1 = arith.constant 0 : i32
    %c1_i32 = arith.constant 1 : i32
    %3 = arith.muli %c0_i32_1, %c1_i32 : i32
    %c0_i32_2 = arith.constant 0 : i32
    %4 = arith.addi %c0_i32_2, %3 : i32
    %c8_i32 = arith.constant 8 : i32
    %5 = arith.muli %4, %c8_i32 : i32
    %6 = tpu.assume_multiple %5, 8 : i32
    %7 = arith.index_cast %6 : i32 to index
    %c0 = arith.constant 0 : index
    %8 = vector.load %arg4[%7, %c0] : memref<8x128xf32, #tpu.memory_space<vmem>>, vector<8x128xf32>
    %9 = arith.index_cast %6 : i32 to index
    %c0_3 = arith.constant 0 : index
    %10 = vector.load %arg5[%9, %c0_3] : memref<8x128xi32, #tpu.memory_space<vmem>>, vector<8x128xi32>
    %11 = arith.index_cast %6 : i32 to index
    %c0_4 = arith.constant 0 : index
    %12 = vector.load %arg2[%11, %c0_4] : memref<8x256xf32, #tpu.memory_space<vmem>>, vector<8x128xf32>
    %13 = arith.cmpf ogt, %12, %8 : vector<8x128xf32>
    %14 = arith.select %13, %12, %8 : vector<8x128xi1>, vector<8x128xf32>
    %c2_i32 = arith.constant 2 : i32
    %15 = arith.muli %arg1, %c2_i32 : i32
    %c0_i32_5 = arith.constant 0 : i32
    %16 = arith.addi %15, %c0_i32_5 : i32
    %17 = vector.broadcast %16 : i32 to vector<8x128xi32>
    %18 = arith.select %13, %17, %10 : vector<8x128xi1>, vector<8x128xi32>
    %19 = arith.index_cast %6 : i32 to index
    %c128 = arith.constant 128 : index
    %20 = vector.load %arg2[%19, %c128] : memref<8x256xf32, #tpu.memory_space<vmem>>, vector<8x128xf32>
    %21 = arith.cmpf ogt, %20, %14 : vector<8x128xf32>
    %22 = arith.select %21, %20, %14 : vector<8x128xi1>, vector<8x128xf32>
    %c2_i32_6 = arith.constant 2 : i32
    %23 = arith.muli %arg1, %c2_i32_6 : i32
    %c1_i32_7 = arith.constant 1 : i32
    %24 = arith.addi %23, %c1_i32_7 : i32
    %25 = vector.broadcast %24 : i32 to vector<8x128xi32>
    %26 = arith.select %21, %25, %18 : vector<8x128xi1>, vector<8x128xi32>
    %27 = arith.index_cast %6 : i32 to index
    %c0_8 = arith.constant 0 : index
    %28 = vector.load %arg4[%27, %c0_8] : memref<8x128xf32, #tpu.memory_space<vmem>>, vector<8x128xf32>
    tpu.vector_store %arg4[%27, %c0_8], %22 {strides = array<i32>} : memref<8x128xf32, #tpu.memory_space<vmem>>, vector<8x128xf32>,
    %29 = arith.index_cast %6 : i32 to index
    %c0_9 = arith.constant 0 : index
    %30 = vector.load %arg5[%29, %c0_9] : memref<8x128xi32, #tpu.memory_space<vmem>>, vector<8x128xi32>
    tpu.vector_store %arg5[%29, %c0_9], %26 {strides = array<i32>} : memref<8x128xi32, #tpu.memory_space<vmem>>, vector<8x128xi32>,
    %c1_i32_10 = arith.constant 1 : i32
    %c0_i32_11 = arith.constant 0 : i32
    %31 = arith.cmpi eq, %arg1, %c0_i32_11 : i32
    %32 = arith.extui %31 : i1 to i32
    %c0_i32_12 = arith.constant 0 : i32
    %33 = arith.cmpi ne, %32, %c0_i32_12 : i32
    scf.if %33 {
      %34 = tpu.iota {dimensions = array<i32: 1>} : vector<8x128xi32>
      %c0_13 = arith.constant 0 : index
      %c0_14 = arith.constant 0 : index
      %35 = vector.load %arg4[%c0_13, %c0_14] : memref<8x128xf32, #tpu.memory_space<vmem>>, vector<8x128xf32>
      %c0_15 = arith.constant 0 : index
      %c0_16 = arith.constant 0 : index
      %36 = vector.load %arg5[%c0_15, %c0_16] : memref<8x128xi32, #tpu.memory_space<vmem>>, vector<8x128xi32>
      %c128_i32 = arith.constant 128 : i32
      %37 = vector.broadcast %c128_i32 : i32 to vector<8x128xi32>
      %38 = arith.muli %36, %37 : vector<8x128xi32>
      %39 = arith.addi %38, %34 : vector<8x128xi32>
      %cst = arith.constant dense<0xFF800000> : vector<8xf32>
      %40 = vector.multi_reduction <maximumf>, %35, %cst [1] : vector<8x128xf32> to vector<8xf32>
      %41 = vector.shape_cast %40 : vector<8xf32> to vector<8x1xf32>
      %42 = vector.broadcast %41 : vector<8x1xf32> to vector<8x128xf32>
      %43 = arith.cmpf oeq, %35, %42 : vector<8x128xf32>
      %c2147483647_i32 = arith.constant 2147483647 : i32
      %44 = vector.broadcast %c2147483647_i32 : i32 to vector<8x128xi32>
      %45 = arith.select %43, %39, %44 : vector<8x128xi1>, vector<8x128xi32>
      %cst_17 = arith.constant dense<2147483647> : vector<8xi32>
      %46 = vector.multi_reduction <minsi>, %45, %cst_17 [1] : vector<8x128xi32> to vector<8xi32>
      %47 = vector.shape_cast %46 : vector<8xi32> to vector<8x1xi32>
      %c31_i32 = arith.constant 31 : i32
      %48 = vector.broadcast %c31_i32 : i32 to vector<8x1xi32>
      %49 = arith.andi %47, %48 : vector<8x1xi32>
      %c0_18 = arith.constant 0 : index
      %c0_19 = arith.constant 0 : index
      %50 = vector.load %arg3[%c0_18, %c0_19] : memref<8x1xi32, #tpu.memory_space<vmem>>, vector<8x1xi32>
      tpu.vector_store %arg3[%c0_18, %c0_19], %49 {strides = array<i32>} : memref<8x1xi32, #tpu.memory_space<vmem>>, vector<8x1xi32>,
    } else {
    }
    return
  }
  func.func @transform_0(%arg0: i32, %arg1: i32) -> (i32, i32) {
    %c0_i32 = arith.constant 0 : i32
    return %arg0, %arg1 : i32, i32
  }
  func.func @transform_1(%arg0: i32, %arg1: i32) -> (i32, i32) {
    %c0_i32 = arith.constant 0 : i32
    %c0_i32_0 = arith.constant 0 : i32
    return %arg0, %c0_i32 : i32, i32
  }
}

</mosaic_0001>

<bundles_post_ra>
// kernel: tpu_custom_call.1
= control target key start
LH: loop header
LB: loop body
LE: loop exit
PB: predicated region body
PF: predicated region fallthrough
CT: control target
= control target key end

     0   :  { %6 = vsyncpa [#allocation5], 0  ;;  %s196_s0 = inlined_call_operand.hbm [shape: f32[4,256], index: 0, kind: input, shape index: {}]   ;;  %s197_s1 = inlined_call_operand.vmem [shape: s32[4,1], index: 1, kind: output, shape index: {}]  }
   0x1   :  { %10 = vsyncadd [#allocation5], 128  ;;  %s11_s8 = sshll.u32 %s196_s0, 4  ;;  %s175_s9 = smov [#allocation4]   ;;  %s12_s8 = int_to_ptr.hbm [resolvable:$true] %s11_s8 }
   0x2   :  { %s13_s10 = sshll.u32 %s175_s9, 4  ;;  %s176_s11 = smov 128   ;;  %s14_s10 = int_to_ptr.vmem [resolvable:$true] %s13_s10 }
   0x3   :  { %s177_s12 = smov 8  }
   0x4   :  { %19 = dma.hbm_to_vmem [thread:$0]  %s12_s8, 128, %s14_s10, [#allocation5], %s176_s11, %s176_s11, %s177_s12  }
   0x5   :  { %173 = dma.done.wait [#allocation5], 256  }
   0x6   :  { %174 = vsyncadd [#allocation5], 4294967040  ;;  %v178_v0 = vmov -inf   ;;  %v35_v2 = vld [vmem:[#allocation4] sm:$0xf]  ;;  %v179_v10 = vmov 0   ;;  %v75_v16 = vlaneseq }
   0x7   :  { %v38_v1 = vrot.slane %v178_v0, 4  ;;  %v36_v3 = vld [vmem:[#allocation4 + $0x8] sm:$0xf]  ;;  %v49_v4 = vld [vmem:[#allocation4 + $0x4] sm:$0xf]  ;;  %vm40_vm0 = vcmp.gt.f32.partialorder %v35_v2, -inf }
   0x8   :  { %v50_v5 = vld [vmem:[#allocation4 + $0xc] sm:$0xf]  ;;  %v42_v6 = vsel %vm40_vm0, %v35_v2, -inf  ;;  %v46_v11 = vrot.slane %v179_v10, 4  ;;  %v76_v18 = vand.u32 127, %v75_v16  ;;  %vm100_vm6 = vcmask 7168  }
   0x9   :  { %vm41_vm1 = vcmp.gt.f32.partialorder %v36_v3, %v38_v1  ;;  %vm51_vm2 = vcmp.gt.f32.partialorder %v49_v4, %v42_v6 }
   0xa   :  { %v43_v7 = vsel %vm41_vm1, %v36_v3, %v38_v1  ;;  %v53_v8 = vsel %vm51_vm2, %v49_v4, %v42_v6  ;;  %v48_v12 = vsel %vm41_vm1, 0, %v46_v11  ;;  %v57_v13 = vsel %vm51_vm2, 1, %v179_v10 }
   0xb   :  { %vm52_vm3 = vcmp.gt.f32.partialorder %v50_v5, %v43_v7  ;;  %61 = vst [vmem:[#allocation1] ss:$2 sm:$0xff] %v53_v8 }
   0xc   :  { %v54_v9 = vsel %vm52_vm3, %v50_v5, %v43_v7  ;;  %v58_v14 = vsel %vm52_vm3, 1, %v48_v12 }
   0xd   :  { %63 = vst [vmem:[#allocation1 + $0x1] ss:$2 sm:$0xff] %v54_v9 }
  0x14   :  { %v64_v15 = vld.sshfl [vmem:[#allocation1] sm:$0xff pattern:$0x75316420] }
  0x15   :  { %81 = vmax.xlane.f32.xlu0 %v64_v15  ;;  %67 = vst [vmem:[#allocation1] ss:$2 sm:$0xff] %v57_v13 }
  0x16   :  { %69 = vst [vmem:[#allocation1 + $0x1] ss:$2 sm:$0xff] %v58_v14 }
  0x1d   :  { %v70_v17 = vld.sshfl [vmem:[#allocation1] sm:$0xff pattern:$0x75316420] }
  0x1e   :  { %v79_v19 = vmul.u32 128, %v70_v17 }
  0x20   :  { %v80_v20 = vadd.s32 %v79_v19, %v76_v18 }
  0x88   :  { %v82_v21 = vpop.xlane.xlu0 %81 }
  0x89   :  { %vm83_vm4 = vcmp.eq.f32.partialorder %v64_v15, %v82_v21 }
  0x8a   :  { %v84_v22 = vsel %vm83_vm4, %v80_v20, 2147483647 }
  0x8b   :  { %v86_v23 = vshra.s32 %v84_v22, 16  ;;  %v85_v25 = vand.u32 65535, %v84_v22 }
  0x8d   :  { %v88_v24 = vcvt.s32.f32 %v86_v23  ;;  %v87_v27 = vcvt.s32.f32 %v85_v25 }
  0x8f   :  { %89 = vmin.xlane.f32.xlu0 %v88_v24 }
 0x102   :  { %v90_v26 = vpop.xlane.xlu0 %89 }
 0x103   :  { %vm91_vm5 = vcmp.eq.f32.partialorder %v88_v24, %v90_v26  ;;  %v96_v29 = vcvt.f32.s32 %v90_v26 }
 0x104   :  { %v92_v28 = vsel %vm91_vm5, %v87_v27, inf }
 0x105   :  { %93 = vmin.xlane.f32.xlu1 %v92_v28  ;;  %v97_v31 = vshll.u32 %v96_v29, 16 }
 0x178   :  { %v94_v30 = vpop.xlane.xlu1 %93 }
 0x179   :  { %v95_v32 = vcvt.f32.s32 %v94_v30 }
 0x17b   :  { %v98_v33 = vadd.s32 %v97_v31, %v95_v32 }
 0x17d   :  { %v99_v34 = vand.u32 31, %v98_v33 }
 0x17f   :  { %101 = vst.msk [vmem:[#allocation6] sm:$0xff] %vm100_vm6, %v99_v34 }
 0x186   :  { %v120_v35 = vld [vmem:[#allocation6] sm:$0xf] }
 0x187   :  { %121 = vst [vmem:[%s197_s1] sm:$0xf] %v120_v35 }
 0x188   :  { %139 = vsyncpa [#allocation5], 1 }

</bundles_post_ra>
